<compile_context>
chip_gen: v5e
topology: v5e:2x2
jax: 0.10.0
libtpu: 0.0.40
codegen_flags: <defaults>
</compile_context>

<pallas_src>
import jax
import jax.numpy as jnp
from jax.experimental import pallas as pl
from jax.experimental.pallas import tpu as pltpu

LANE = 128  # TPU lane width; output last dim is kept a multiple of this.


def _round_up(x, m):
    return (x + m - 1) // m * m


def _mlp_kernel(x_ref, w1_ref, b1_ref, w2_ref, b2_ref, w3_ref, b3_ref,
                w4_ref, b4_ref, o_ref):
    # fc1 + ReLU  (bf16 operands, f32 MXU accumulation)
    h = jnp.dot(x_ref[...], w1_ref[...], preferred_element_type=jnp.float32)
    h = jnp.maximum(h + b1_ref[...], 0.0)
    # dropout(p=0.1): identity at inference
    # fc2 + ReLU
    h = jnp.dot(h.astype(jnp.bfloat16), w2_ref[...],
                preferred_element_type=jnp.float32)
    h = jnp.maximum(h + b2_ref[...], 0.0)
    # dropout(p=0.1): identity at inference
    # fc3 + ReLU
    h = jnp.dot(h.astype(jnp.bfloat16), w3_ref[...],
                preferred_element_type=jnp.float32)
    h = jnp.maximum(h + b3_ref[...], 0.0)
    # fc4 (no activation) -> lane-dense padded output slab
    out = jnp.dot(h.astype(jnp.bfloat16), w4_ref[...],
                  preferred_element_type=jnp.float32)
    o_ref[...] = (out + b4_ref[...]).astype(o_ref.dtype)


def _pick_tile_m(batch):
    """Batch-tile size: bf16-packed (mult of 16) small path, MXU-filling
    (mult of 256) large path with >=2 grid steps for v7x's two TCs."""
    if batch <= 256:
        # Single grid step; 16-row granule avoids bf16 sublane repacking.
        return _round_up(batch, 16)
    # Split batch over >=2 grid steps, multiples of 256, capped at 1024.
    return min(1024, max(256, _round_up(pl.cdiv(batch, 2), 256)))


def dqn_forward(x, params):
    """x: (batch, state_dim) f32/bf16. params: bf16 (in,out) weights, f32 (1,out) biases."""
    batch, state_dim = x.shape
    action_dim = params["w4"].shape[1]

    # --- lane-dense output: pad fc4 out-features to a multiple of 128 ------
    n_out = _round_up(max(action_dim, LANE), LANE)
    w4 = jnp.pad(params["w4"], ((0, 0), (0, n_out - action_dim)))
    b4 = jnp.pad(params["b4"], ((0, 0), (0, n_out - action_dim)))
    w1, b1 = params["w1"], params["b1"]
    w2, b2 = params["w2"], params["b2"]
    w3, b3 = params["w3"], params["b3"]

    # --- batch tiling: weights stay resident, x/out are streamed per tile --
    tile_m = _pick_tile_m(batch)
    padded_batch = _round_up(batch, tile_m)
    xp = x.astype(jnp.bfloat16)
    if padded_batch != batch:
        xp = jnp.pad(xp, ((0, padded_batch - batch), (0, 0)))
    grid = (padded_batch // tile_m,)

    def _resident(arr):
        # Full-array block, same block index for every grid step (resident).
        return pl.BlockSpec(arr.shape, lambda i, _nd=arr.ndim: (0,) * _nd,
                            memory_space=pltpu.VMEM)

    in_specs = [
        pl.BlockSpec((tile_m, state_dim), lambda i: (i, 0),
                     memory_space=pltpu.VMEM),                 # x tile
        _resident(w1), _resident(b1),
        _resident(w2), _resident(b2),
        _resident(w3), _resident(b3),
        _resident(w4), _resident(b4),
    ]
    out_spec = pl.BlockSpec((tile_m, n_out), lambda i: (i, 0),
                            memory_space=pltpu.VMEM)

    out_padded = pl.pallas_call(
        _mlp_kernel,
        out_shape=jax.ShapeDtypeStruct((padded_batch, n_out), jnp.float32),
        grid=grid,
        in_specs=in_specs,
        out_specs=out_spec,
        compiler_params=pltpu.CompilerParams(
            dimension_semantics=("parallel",)),
    )(xp, w1, b1, w2, b2, w3, b3, w4, b4)

    return out_padded[:batch, :action_dim]


def init_params(key, state_dim, action_dim):
    """nn.Linear default init U(-1/sqrt(in), 1/sqrt(in)); weights stored bf16 (in,out)."""
    dims = [(state_dim, 512), (512, 256), (256, 128), (128, action_dim)]
    params = {}
    for i, (din, dout) in enumerate(dims, start=1):
        key, kw, kb = jax.random.split(key, 3)
        bound = 1.0 / jnp.sqrt(jnp.float32(din))
        params[f"w{i}"] = jax.random.uniform(
            kw, (din, dout), jnp.float32,
            minval=-bound, maxval=bound).astype(jnp.bfloat16)
        params[f"b{i}"] = jax.random.uniform(
            kb, (1, dout), jnp.float32, minval=-bound, maxval=bound)
    return params


def reference_forward(x, p):
    """Pure-JAX reference with identical dtypes (bf16 matmul, f32 accumulation)."""
    h = x.astype(jnp.bfloat16)
    h = jnp.maximum(
        jnp.dot(h, p["w1"], preferred_element_type=jnp.float32) + p["b1"], 0.0)
    h = jnp.maximum(
        jnp.dot(h.astype(jnp.bfloat16), p["w2"],
                preferred_element_type=jnp.float32) + p["b2"], 0.0)
    h = jnp.maximum(
        jnp.dot(h.astype(jnp.bfloat16), p["w3"],
                preferred_element_type=jnp.float32) + p["b3"], 0.0)
    return jnp.dot(h.astype(jnp.bfloat16), p["w4"],
                   preferred_element_type=jnp.float32) + p["b4"]


if __name__ == "__main__":
    state_dim, action_dim = 16, 4
    key = jax.random.PRNGKey(0)
    key, kx, kx2 = jax.random.split(key, 3)
    params = init_params(key, state_dim, action_dim)

    # Small online-inference batch (single grid step, 16-row padded tile).
    x = jax.random.normal(kx, (8, state_dim), jnp.float32)
    out = jax.block_until_ready(dqn_forward(x, params))
    ref = reference_forward(x, params)
    assert out.shape == (8, action_dim)
    assert jnp.allclose(out, ref, atol=2e-3, rtol=2e-3)

    # Larger batch exercising the MXU-filling tiled path (tile_m=256, grid=2,
    # both v7x TensorCores active via the "parallel" grid axis).
    x2 = jax.random.normal(kx2, (512, state_dim), jnp.float32)
    out2 = jax.block_until_ready(dqn_forward(x2, params))
    ref2 = reference_forward(x2, params)
    assert out2.shape == (512, action_dim)
    assert jnp.allclose(out2, ref2, atol=2e-3, rtol=2e-3)

    print("KERNEL_OK")
</pallas_src>

<mosaic_0001>
module attributes {stable_mosaic.version = 11 : i64} {
  func.func @_mlp_kernel(%arg0: i32, %arg1: memref<16x16xbf16, #tpu.memory_space<vmem>>, %arg2: memref<16x512xbf16, #tpu.memory_space<vmem>>, %arg3: memref<1x512xf32, #tpu.memory_space<vmem>>, %arg4: memref<512x256xbf16, #tpu.memory_space<vmem>>, %arg5: memref<1x256xf32, #tpu.memory_space<vmem>>, %arg6: memref<256x128xbf16, #tpu.memory_space<vmem>>, %arg7: memref<1x128xf32, #tpu.memory_space<vmem>>, %arg8: memref<128x128xbf16, #tpu.memory_space<vmem>>, %arg9: memref<1x128xf32, #tpu.memory_space<vmem>>, %arg10: memref<16x128xf32, #tpu.memory_space<vmem>>) attributes {dimension_semantics = [#tpu.dimension_semantics<parallel>], iteration_bounds = array<i64: 1>, scalar_prefetch = 0 : i64, scratch_operands = 0 : i64, tpu.core_type = #tpu.core_type<tc>, window_params = [{transform_indices = @transform_0, window_bounds = array<i64: 16, 16>}, {pipeline_mode = #tpu.pipeline_mode<synchronous>, transform_indices = @transform_1, window_bounds = array<i64: 16, 512>}, {pipeline_mode = #tpu.pipeline_mode<synchronous>, transform_indices = @transform_2, window_bounds = array<i64: 1, 512>}, {pipeline_mode = #tpu.pipeline_mode<synchronous>, transform_indices = @transform_3, window_bounds = array<i64: 512, 256>}, {pipeline_mode = #tpu.pipeline_mode<synchronous>, transform_indices = @transform_4, window_bounds = array<i64: 1, 256>}, {pipeline_mode = #tpu.pipeline_mode<synchronous>, transform_indices = @transform_5, window_bounds = array<i64: 256, 128>}, {pipeline_mode = #tpu.pipeline_mode<synchronous>, transform_indices = @transform_6, window_bounds = array<i64: 1, 128>}, {pipeline_mode = #tpu.pipeline_mode<synchronous>, transform_indices = @transform_7, window_bounds = array<i64: 128, 128>}, {pipeline_mode = #tpu.pipeline_mode<synchronous>, transform_indices = @transform_8, window_bounds = array<i64: 1, 128>}, {transform_indices = @transform_9, window_bounds = array<i64: 16, 128>}]} {
    %c0 = arith.constant 0 : index
    %c0_0 = arith.constant 0 : index
    %0 = vector.load %arg1[%c0, %c0_0] : memref<16x16xbf16, #tpu.memory_space<vmem>>, vector<16x16xbf16>
    %c0_1 = arith.constant 0 : index
    %c0_2 = arith.constant 0 : index
    %1 = vector.load %arg2[%c0_1, %c0_2] : memref<16x512xbf16, #tpu.memory_space<vmem>>, vector<16x512xbf16>
    %cst = arith.constant dense<0.000000e+00> : vector<16x512xf32>
    %2 = tpu.matmul %0, %1, %cst {dimension_numbers = #tpu.dot_dimension_numbers<[1], [0], [0], [1], [0, 0, 1, 1], [], []>} : vector<16x16xbf16>, vector<16x512xbf16>, vector<16x512xf32> -> vector<16x512xf32>
    %c0_3 = arith.constant 0 : index
    %c0_4 = arith.constant 0 : index
    %3 = vector.load %arg3[%c0_3, %c0_4] : memref<1x512xf32, #tpu.memory_space<vmem>>, vector<1x512xf32>
    %4 = vector.broadcast %3 : vector<1x512xf32> to vector<16x512xf32>
    %5 = arith.addf %2, %4 : vector<16x512xf32>
    %cst_5 = arith.constant 0.000000e+00 : f32
    %6 = vector.broadcast %cst_5 : f32 to vector<16x512xf32>
    %7 = arith.maximumf %5, %6 : vector<16x512xf32>
    %8 = arith.truncf %7 : vector<16x512xf32> to vector<16x512xbf16>
    %c0_6 = arith.constant 0 : index
    %c0_7 = arith.constant 0 : index
    %9 = vector.load %arg4[%c0_6, %c0_7] : memref<512x256xbf16, #tpu.memory_space<vmem>>, vector<512x256xbf16>
    %cst_8 = arith.constant dense<0.000000e+00> : vector<16x256xf32>
    %10 = tpu.matmul %8, %9, %cst_8 {dimension_numbers = #tpu.dot_dimension_numbers<[1], [0], [0], [1], [0, 0, 1, 1], [], []>} : vector<16x512xbf16>, vector<512x256xbf16>, vector<16x256xf32> -> vector<16x256xf32>
    %c0_9 = arith.constant 0 : index
    %c0_10 = arith.constant 0 : index
    %11 = vector.load %arg5[%c0_9, %c0_10] : memref<1x256xf32, #tpu.memory_space<vmem>>, vector<1x256xf32>
    %12 = vector.broadcast %11 : vector<1x256xf32> to vector<16x256xf32>
    %13 = arith.addf %10, %12 : vector<16x256xf32>
    %cst_11 = arith.constant 0.000000e+00 : f32
    %14 = vector.broadcast %cst_11 : f32 to vector<16x256xf32>
    %15 = arith.maximumf %13, %14 : vector<16x256xf32>
    %16 = arith.truncf %15 : vector<16x256xf32> to vector<16x256xbf16>
    %c0_12 = arith.constant 0 : index
    %c0_13 = arith.constant 0 : index
    %17 = vector.load %arg6[%c0_12, %c0_13] : memref<256x128xbf16, #tpu.memory_space<vmem>>, vector<256x128xbf16>
    %cst_14 = arith.constant dense<0.000000e+00> : vector<16x128xf32>
    %18 = tpu.matmul %16, %17, %cst_14 {dimension_numbers = #tpu.dot_dimension_numbers<[1], [0], [0], [1], [0, 0, 1, 1], [], []>} : vector<16x256xbf16>, vector<256x128xbf16>, vector<16x128xf32> -> vector<16x128xf32>
    %c0_15 = arith.constant 0 : index
    %c0_16 = arith.constant 0 : index
    %19 = vector.load %arg7[%c0_15, %c0_16] : memref<1x128xf32, #tpu.memory_space<vmem>>, vector<1x128xf32>
    %20 = vector.broadcast %19 : vector<1x128xf32> to vector<16x128xf32>
    %21 = arith.addf %18, %20 : vector<16x128xf32>
    %cst_17 = arith.constant 0.000000e+00 : f32
    %22 = vector.broadcast %cst_17 : f32 to vector<16x128xf32>
    %23 = arith.maximumf %21, %22 : vector<16x128xf32>
    %24 = arith.truncf %23 : vector<16x128xf32> to vector<16x128xbf16>
    %c0_18 = arith.constant 0 : index
    %c0_19 = arith.constant 0 : index
    %25 = vector.load %arg8[%c0_18, %c0_19] : memref<128x128xbf16, #tpu.memory_space<vmem>>, vector<128x128xbf16>
    %cst_20 = arith.constant dense<0.000000e+00> : vector<16x128xf32>
    %26 = tpu.matmul %24, %25, %cst_20 {dimension_numbers = #tpu.dot_dimension_numbers<[1], [0], [0], [1], [0, 0, 1, 1], [], []>} : vector<16x128xbf16>, vector<128x128xbf16>, vector<16x128xf32> -> vector<16x128xf32>
    %c0_21 = arith.constant 0 : index
    %c0_22 = arith.constant 0 : index
    %27 = vector.load %arg9[%c0_21, %c0_22] : memref<1x128xf32, #tpu.memory_space<vmem>>, vector<1x128xf32>
    %28 = vector.broadcast %27 : vector<1x128xf32> to vector<16x128xf32>
    %29 = arith.addf %26, %28 : vector<16x128xf32>
    %c0_23 = arith.constant 0 : index
    %c0_24 = arith.constant 0 : index
    %30 = vector.load %arg10[%c0_23, %c0_24] : memref<16x128xf32, #tpu.memory_space<vmem>>, vector<16x128xf32>
    tpu.vector_store %arg10[%c0_23, %c0_24], %29 {strides = array<i32>} : memref<16x128xf32, #tpu.memory_space<vmem>>, vector<16x128xf32>,
    return
  }
  func.func @transform_0(%arg0: i32) -> (i32, i32) {
    %c0_i32 = arith.constant 0 : i32
    %c0_i32_0 = arith.constant 0 : i32
    return %arg0, %c0_i32 : i32, i32
  }
  func.func @transform_1(%arg0: i32) -> (i32, i32) {
    %c0_i32 = arith.constant 0 : i32
    %c0_i32_0 = arith.constant 0 : i32
    %c0_i32_1 = arith.constant 0 : i32
    return %c0_i32, %c0_i32_0 : i32, i32
  }
  func.func @transform_2(%arg0: i32) -> (i32, i32) {
    %c0_i32 = arith.constant 0 : i32
    %c0_i32_0 = arith.constant 0 : i32
    %c0_i32_1 = arith.constant 0 : i32
    return %c0_i32, %c0_i32_0 : i32, i32
  }
  func.func @transform_3(%arg0: i32) -> (i32, i32) {
    %c0_i32 = arith.constant 0 : i32
    %c0_i32_0 = arith.constant 0 : i32
    %c0_i32_1 = arith.constant 0 : i32
    return %c0_i32, %c0_i32_0 : i32, i32
  }
  func.func @transform_4(%arg0: i32) -> (i32, i32) {
    %c0_i32 = arith.constant 0 : i32
    %c0_i32_0 = arith.constant 0 : i32
    %c0_i32_1 = arith.constant 0 : i32
    return %c0_i32, %c0_i32_0 : i32, i32
  }
  func.func @transform_5(%arg0: i32) -> (i32, i32) {
    %c0_i32 = arith.constant 0 : i32
    %c0_i32_0 = arith.constant 0 : i32
    %c0_i32_1 = arith.constant 0 : i32
    return %c0_i32, %c0_i32_0 : i32, i32
  }
  func.func @transform_6(%arg0: i32) -> (i32, i32) {
    %c0_i32 = arith.constant 0 : i32
    %c0_i32_0 = arith.constant 0 : i32
    %c0_i32_1 = arith.constant 0 : i32
    return %c0_i32, %c0_i32_0 : i32, i32
  }
  func.func @transform_7(%arg0: i32) -> (i32, i32) {
    %c0_i32 = arith.constant 0 : i32
    %c0_i32_0 = arith.constant 0 : i32
    %c0_i32_1 = arith.constant 0 : i32
    return %c0_i32, %c0_i32_0 : i32, i32
  }
  func.func @transform_8(%arg0: i32) -> (i32, i32) {
    %c0_i32 = arith.constant 0 : i32
    %c0_i32_0 = arith.constant 0 : i32
    %c0_i32_1 = arith.constant 0 : i32
    return %c0_i32, %c0_i32_0 : i32, i32
  }
  func.func @transform_9(%arg0: i32) -> (i32, i32) {
    %c0_i32 = arith.constant 0 : i32
    %c0_i32_0 = arith.constant 0 : i32
    return %arg0, %c0_i32 : i32, i32
  }
}

</mosaic_0001>

<bundles_post_ra>
// kernel: tpu_custom_call.1
= control target key start
LH: loop header
LB: loop body
LE: loop exit
PB: predicated region body
PF: predicated region fallthrough
CT: control target
= control target key end

     0   :  { %14 = vsyncpa [#allocation3], 0  ;;  %s1793_s0 = inlined_call_operand.hbm [shape: bf16[16,16], index: 0, kind: input, shape index: {}]   ;;  %s1794_s1 = inlined_call_operand.hbm [shape: bf16[16,512], index: 1, kind: input, shape index: {}]   ;;  %s1795_s2 = inlined_call_operand.hbm [shape: f32[1,512], index: 2, kind: input, shape index: {}]   ;;  %s1796_s3 = inlined_call_operand.hbm [shape: bf16[512,256], index: 3, kind: input, shape index: {}]   ;;  %s1797_s4 = inlined_call_operand.vmem [shape: f32[1,256], index: 4, kind: input, shape index: {}]   ;;  %s1798_s5 = inlined_call_operand.hbm [shape: bf16[256,128], index: 5, kind: input, shape index: {}]   ;;  %s1799_s6 = inlined_call_operand.vmem [shape: f32[1,128], index: 6, kind: input, shape index: {}]   ;;  %s1800_s7 = inlined_call_operand.hbm [shape: bf16[128,128], index: 7, kind: input, shape index: {}]   ;;  %s1801_s8 = inlined_call_operand.vmem [shape: f32[1,128], index: 8, kind: input, shape index: {}]   ;;  %s1802_s9 = inlined_call_operand.hbm [shape: f32[16,128], index: 9, kind: output, shape index: {}]  }
   0x1   :  { %15 = vsyncpa [#allocation6], 0 }
   0x2   :  { %16 = vsyncpa [#allocation9], 0 }
   0x3   :  { %17 = vsyncpa [#allocation12], 0  ;;  %s36_s11 = sshll.u32 %s1794_s1, 4  ;;  %s37_s11 = int_to_ptr.hbm [resolvable:$true] %s36_s11 }
   0x4   :  { %18 = vsyncpa [#allocation4], 0  ;;  %s1678_s12 = smov [#allocation5]   ;;  %s60_s16 = sshll.u32 %s1796_s3, 4  ;;  %s61_s16 = int_to_ptr.hbm [resolvable:$true] %s60_s16 }
   0x5   :  { %s38_s13 = sshll.u32 %s1678_s12, 4  ;;  %s1679_s17 = smov 256   ;;  %s39_s13 = int_to_ptr.vmem [resolvable:$true] %s38_s13 }
   0x6   :  { %s1680_s18 = smov 16   ;;  %s1681_s19 = smov [#allocation8]  }
   0x7   :  { %44 = dma.hbm_to_vmem [thread:$0]  %s37_s11, 512, %s39_s13, [#allocation6], %s1679_s17, %s1679_s17, %s1680_s18  }
   0x8   :  { %s62_s20 = sshll.u32 %s1681_s19, 4  ;;  %s1682_s21 = smov 128   ;;  %s63_s20 = int_to_ptr.vmem [resolvable:$true] %s62_s20 }
   0x9   :  { %s1683_s22 = smov 8   ;;  %s23_s24 = sshll.u32 %s1793_s0, 4  ;;  %s24_s24 = int_to_ptr.hbm [resolvable:$true] %s23_s24 }
   0xa   :  { %68 = dma.hbm_to_vmem [thread:$0]  %s61_s16, 8192, %s63_s20, [#allocation9], %s1682_s21, %s1682_s21, %s1683_s22  }
   0xb   :  { %s1684_s25 = smov [#allocation2]   ;;  %s50_s28 = sshll.u32 %s1795_s2, 4  ;;  %s51_s28 = int_to_ptr.hbm [resolvable:$true] %s50_s28 }
   0xc   :  { %s25_s3 = sshll.u32 %s1684_s25, 4  ;;  %s1685_s29 = smov 64   ;;  %s26_s3 = int_to_ptr.vmem [resolvable:$true] %s25_s3 }
   0xd   :  { %s1686_s30 = smov 4   ;;  %s1687_s10 = smov [#allocation7]  }
   0xe   :  { %31 = dma.hbm_to_vmem [thread:$0]  %s24_s24, 128, %s26_s3, [#allocation3], %s1685_s29, %s1685_s29, %s1686_s30  }
   0xf   :  { %s52_s11 = sshll.u32 %s1687_s10, 4  ;;  %s75_s14 = sshll.u32 %s1798_s5, 4  ;;  %s53_s11 = int_to_ptr.vmem [resolvable:$true] %s52_s11  ;;  %s76_s14 = int_to_ptr.hbm [resolvable:$true] %s75_s14 }
  0x10   :  { %55 = dma.hbm_to_vmem [thread:$0]  %s51_s28, 64, %s53_s11, [#allocation6]  }
  0x11   :  { %s90_s16 = sshll.u32 %s1800_s7, 4  ;;  %s1688_s17 = smov [#allocation10]   ;;  %s91_s16 = int_to_ptr.hbm [resolvable:$true] %s90_s16 }
  0x12   :  { %s77_s18 = sshll.u32 %s1688_s17, 4  ;;  %s1689_s2 = smov [#allocation11]   ;;  %s78_s18 = int_to_ptr.vmem [resolvable:$true] %s77_s18 }
  0x13   :  { %83 = dma.hbm_to_vmem [thread:$0]  %s76_s14, 2048, %s78_s18, [#allocation9], %s1685_s29, %s1685_s29, %s1686_s30  }
  0x14   :  { %s92_s19 = sshll.u32 %s1689_s2, 4  ;;  %s93_s19 = int_to_ptr.vmem [resolvable:$true] %s92_s19 }
  0x15   :  { %98 = dma.hbm_to_vmem [thread:$0]  %s91_s16, 1024, %s93_s19, [#allocation12], %s1685_s29, %s1685_s29, %s1686_s30  }
  0x16   :  { %1668 = dma.done.wait [#allocation3], 128  }
  0x17   :  { %1669 = vsyncadd [#allocation3], 4294967168 }
  0x18   :  { %1670 = dma.done.wait [#allocation6], 576  }
  0x19   :  { %1671 = vsyncadd [#allocation6], 4294966720 }
  0x1a   :  { %1672 = dma.done.wait [#allocation9], 10240  }
  0x1b   :  { %1673 = vsyncadd [#allocation9], 4294957056 }
  0x1c   :  { %1674 = dma.done.wait [#allocation12], 1024  }
  0x1d   :  { %1675 = vsyncadd [#allocation12], 4294966272  ;;  %v1022_v0 = vld [vmem:[#allocation5] sm:$0xf]  ;;  %v1395_v1 = vld [vmem:[#allocation5 + $0xc] sm:$0xf0] }
  0x1e   :  { %v1393_v2 = vld [vmem:[#allocation5 + $0x4] sm:$0xf]  ;;  %v1023_v3 = vor.u32 %v1395_v1, %v1022_v0  ;;  %v1024_v4 = vld [vmem:[#allocation5 + $0x10] sm:$0xf0]  ;;  %v1030_v5 = vld [vmem:[#allocation5 + $0x8] sm:$0xf] }
  0x1f   :  { %v1396_v6 = vld [vmem:[#allocation5 + $0x14] sm:$0xf0]  ;;  %v1027_v7 = vor.u32 %v1393_v2, %v1024_v4  ;;  %vm167_vm0 = vcmask 130048   ;;  %v1394_v10 = vld [vmem:[#allocation5 + $0xc] sm:$0xf]  ;;  %s1690_s24 = smov [#allocation13]  }
  0x20   :  { %v1031_v8 = vor.u32 %v1396_v6, %v1030_v5  ;;  %v1762_v9 = vld [vmem:[#allocation2] sm:$0xff]  ;;  %178 = vmatpush.bf16.msra.mxu3 %v1023_v3  ;;  %v1162_v13 = vld [vmem:[#allocation8 + $0xf0] sm:$0xf]  ;;  %v1154_v15 = vld [vmem:[#allocation8 + $0xe0] sm:$0xf]  ;;  %s998_s25 = sshll.u32 %s1690_s24, 4  ;;  %s999_s25 = int_to_ptr.vmem [resolvable:$true] %s998_s25 }
  0x21   :  { %v1032_v11 = vld [vmem:[#allocation5 + $0x18] sm:$0xf0]  ;;  %192 = vmatpush.bf16.msra.mxu1 %v1027_v7  ;;  %v1426_v17 = vld [vmem:[#allocation8 + $0xe4] sm:$0xf0]  ;;  %v1098_v18 = vld [vmem:[#allocation8 + $0x70] sm:$0xf] }
  0x22   :  { %v1035_v12 = vor.u32 %v1394_v10, %v1032_v11  ;;  %v1428_v14 = vld [vmem:[#allocation8 + $0xf4] sm:$0xf0]  ;;  %206 = vmatpush.bf16.msra.mxu2 %v1031_v8  ;;  %v1226_v21 = vld [vmem:[#allocation8 + $0x170] sm:$0xf]  ;;  %v1155_v23 = vor.u32 %v1426_v17, %v1154_v15  ;;  %v1090_v26 = vld [vmem:[#allocation8 + $0x60] sm:$0xf] }
  0x23   :  { %v1163_v16 = vor.u32 %v1428_v14, %v1162_v13  ;;  %v1412_v19 = vld [vmem:[#allocation8 + $0x74] sm:$0xf0]  ;;  %1036 = vmatmul.msk.bf16.vlgmr.msra.gmra.mxu3 %vm167_vm0, %v1762_v9  ;;  %v1146_v25 = vld [vmem:[#allocation8 + $0xd0] sm:$0xf]  ;;  %v1410_v27 = vld [vmem:[#allocation8 + $0x64] sm:$0xf0] }
  0x24   :  { %220 = vmatpush.bf16.msrb.mxu3 %v1035_v12  ;;  %v1099_v20 = vor.u32 %v1412_v19, %v1098_v18  ;;  %v1444_v22 = vld [vmem:[#allocation8 + $0x174] sm:$0xf0]  ;;  %1037 = vmatmul.msk.bf16.vlgmr.msra.gmra.mxu1 %vm167_vm0, %v1762_v9  ;;  %v1218_v29 = vld [vmem:[#allocation8 + $0x160] sm:$0xf]  ;;  %v1442_v30 = vld [vmem:[#allocation8 + $0x164] sm:$0xf0]  ;;  %v1091_v31 = vor.u32 %v1410_v27, %v1090_v26 }
  0x25   :  { %643 = vmatpush.bf16.msrb.mxu1 %v1163_v16  ;;  %v1227_v24 = vor.u32 %v1444_v22, %v1226_v21  ;;  %1038 = vmatmul.msk.bf16.vlgmr.msra.gmra.mxu2 %vm167_vm0, %v1762_v9  ;;  %v1424_v28 = vld [vmem:[#allocation8 + $0xd4] sm:$0xf0]  ;;  %v1219_v32 = vor.u32 %v1442_v30, %v1218_v29  ;;  %v1082_v33 = vld [vmem:[#allocation8 + $0x50] sm:$0xf]  ;;  %v1138_v38 = vld [vmem:[#allocation8 + $0xc0] sm:$0xf] }
  0x26   :  { %629 = vmatpush.bf16.msra.mxu0 %v1099_v20  ;;  %v1408_v34 = vld [vmem:[#allocation8 + $0x54] sm:$0xf0]  ;;  %v1210_v35 = vld [vmem:[#allocation8 + $0x150] sm:$0xf]  ;;  %v1147_v37 = vor.u32 %v1424_v28, %v1146_v25  ;;  %v1422_v39 = vld [vmem:[#allocation8 + $0xc4] sm:$0xf0] }
  0x27   :  { %657 = vmatpush.bf16.msrb.mxu2 %v1227_v24  ;;  %v1440_v36 = vld [vmem:[#allocation8 + $0x154] sm:$0xf0]  ;;  %v1083_v40 = vor.u32 %v1408_v34, %v1082_v33  ;;  %v1074_v42 = vld [vmem:[#allocation8 + $0x40] sm:$0xf]  ;;  %v1406_v43 = vld [vmem:[#allocation8 + $0x44] sm:$0xf0]  ;;  %v1139_v47 = vor.u32 %v1422_v39, %v1138_v38 }
  0x28   :  { %v1211_v41 = vor.u32 %v1440_v36, %v1210_v35  ;;  %v1202_v44 = vld [vmem:[#allocation8 + $0x140] sm:$0xf]  ;;  %v1438_v45 = vld [vmem:[#allocation8 + $0x144] sm:$0xf0]  ;;  %v1290_v46 = vld [vmem:[#allocation8 + $0x1f0] sm:$0xf]  ;;  %v1075_v52 = vor.u32 %v1406_v43, %v1074_v42 }
  0x29   :  { %644 = vmatpush.bf16.msrb.mxu1 %v1155_v23  ;;  %v1460_v48 = vld [vmem:[#allocation8 + $0x1f4] sm:$0xf0]  ;;  %v1130_v49 = vld [vmem:[#allocation8 + $0xb0] sm:$0xf]  ;;  %v1203_v53 = vor.u32 %v1438_v45, %v1202_v44  ;;  %v1282_v55 = vld [vmem:[#allocation8 + $0x1e0] sm:$0xf] }
  0x2a   :  { %630 = vmatpush.bf16.msra.mxu0 %v1091_v31  ;;  %v1420_v50 = vld [vmem:[#allocation8 + $0xb4] sm:$0xf0]  ;;  %v1291_v51 = vor.u32 %v1460_v48, %v1290_v46  ;;  %v1066_v54 = vld [vmem:[#allocation8 + $0x30] sm:$0xf]  ;;  %v1458_v56 = vld [vmem:[#allocation8 + $0x1e4] sm:$0xf0] }
  0x2b   :  { %658 = vmatpush.bf16.msrb.mxu2 %v1219_v32  ;;  %v1404_v57 = vld [vmem:[#allocation8 + $0x34] sm:$0xf0]  ;;  %v1194_v58 = vld [vmem:[#allocation8 + $0x130] sm:$0xf]  ;;  %v1283_v60 = vor.u32 %v1458_v56, %v1282_v55  ;;  %v1131_v61 = vor.u32 %v1420_v50, %v1130_v49  ;;  %v1122_v62 = vld [vmem:[#allocation8 + $0xa0] sm:$0xf] }
  0x2c   :  { %v1436_v59 = vld [vmem:[#allocation8 + $0x134] sm:$0xf0]  ;;  %671 = vmatpush.bf16.msra.mxu3 %v1291_v51  ;;  %v1418_v63 = vld [vmem:[#allocation8 + $0xa4] sm:$0xf0]  ;;  %v1067_v0 = vor.u32 %v1404_v57, %v1066_v54  ;;  %v1058_v2 = vld [vmem:[#allocation8 + $0x20] sm:$0xf] }
  0x2d   :  { %645 = vmatpush.bf16.msrb.mxu1 %v1147_v37  ;;  %v1195_v1 = vor.u32 %v1436_v59, %v1194_v58  ;;  %v1402_v3 = vld [vmem:[#allocation8 + $0x24] sm:$0xf0]  ;;  %v1186_v4 = vld [vmem:[#allocation8 + $0x120] sm:$0xf]  ;;  %v1123_v6 = vor.u32 %v1418_v63, %v1122_v62  ;;  %v1114_v7 = vld [vmem:[#allocation8 + $0x90] sm:$0xf] }
  0x2e   :  { %631 = vmatpush.bf16.msra.mxu0 %v1083_v40  ;;  %v1434_v5 = vld [vmem:[#allocation8 + $0x124] sm:$0xf0]  ;;  %v1416_v8 = vld [vmem:[#allocation8 + $0x94] sm:$0xf0]  ;;  %v1059_v10 = vor.u32 %v1402_v3, %v1058_v2  ;;  %v1106_v13 = vld [vmem:[#allocation8 + $0x80] sm:$0xf] }
  0x2f   :  { %659 = vmatpush.bf16.msrb.mxu2 %v1211_v41  ;;  %v1187_v11 = vor.u32 %v1434_v5, %v1186_v4  ;;  %v1115_v12 = vor.u32 %v1416_v8, %v1114_v7  ;;  %v1414_v14 = vld [vmem:[#allocation8 + $0x84] sm:$0xf0]  ;;  %v1427_v16 = vld [vmem:[#allocation8 + $0xf4] sm:$0xf]  ;;  %v1164_v17 = vld [vmem:[#allocation8 + $0xf8] sm:$0xf0] }
  0x30   :  { %672 = vmatpush.bf16.msra.mxu3 %v1283_v60  ;;  %v1107_v15 = vor.u32 %v1414_v14, %v1106_v13  ;;  %v1050_v18 = vld [vmem:[#allocation8 + $0x10] sm:$0xf]  ;;  %v1400_v19 = vld [vmem:[#allocation8 + $0x14] sm:$0xf0]  ;;  %v1425_v27 = vld [vmem:[#allocation8 + $0xe4] sm:$0xf] }
  0x31   :  { %646 = vmatpush.bf16.msrb.mxu1 %v1139_v47  ;;  %v1178_v20 = vld [vmem:[#allocation8 + $0x110] sm:$0xf]  ;;  %v1051_v21 = vor.u32 %v1400_v19, %v1050_v18  ;;  %v1432_v22 = vld [vmem:[#allocation8 + $0x114] sm:$0xf0]  ;;  %v1156_v28 = vld [vmem:[#allocation8 + $0xe8] sm:$0xf0] }
  0x32   :  { %632 = vmatpush.bf16.msra.mxu0 %v1075_v52  ;;  %v1274_v23 = vld [vmem:[#allocation8 + $0x1d0] sm:$0xf]  ;;  %v1456_v24 = vld [vmem:[#allocation8 + $0x1d4] sm:$0xf0]  ;;  %v1179_v25 = vor.u32 %v1432_v22, %v1178_v20  ;;  %v1159_v29 = vor.u32 %v1425_v27, %v1156_v28  ;;  %v1042_v30 = vld [vmem:[#allocation8] sm:$0xf] }
  0x33   :  { %660 = vmatpush.bf16.msrb.mxu2 %v1203_v53  ;;  %1039 = vmatmul.msk.bf16.vlgmr.msrb.gmra.mxu3 %vm167_vm0, %v1762_v9  ;;  %v1167_v9 = vor.u32 %v1427_v16, %v1164_v17  ;;  %v1275_v26 = vor.u32 %v1456_v24, %v1274_v23  ;;  %v1398_v31 = vld [vmem:[#allocation8 + $0x4] sm:$0xf0]  ;;  %v1170_v32 = vld [vmem:[#allocation8 + $0x100] sm:$0xf]  ;;  %v1411_v39 = vld [vmem:[#allocation8 + $0x74] sm:$0xf] }
  0x34   :  { %v1043_v33 = vor.u32 %v1398_v31, %v1042_v30  ;;  %v1430_v34 = vld [vmem:[#allocation8 + $0x104] sm:$0xf0]  ;;  %v1266_v35 = vld [vmem:[#allocation8 + $0x1c0] sm:$0xf]  ;;  %v1100_v40 = vld [vmem:[#allocation8 + $0x78] sm:$0xf0] }
  0x35   :  { %647 = vmatpush.bf16.msrb.mxu1 %v1131_v61  ;;  %673 = vmatpush.bf16.msra.mxu3 %v1275_v26  ;;  %v1454_v36 = vld [vmem:[#allocation8 + $0x1c4] sm:$0xf0]  ;;  %v1171_v37 = vor.u32 %v1430_v34, %v1170_v32  ;;  %v1103_v41 = vor.u32 %v1411_v39, %v1100_v40  ;;  %v1443_v42 = vld [vmem:[#allocation8 + $0x174] sm:$0xf]  ;;  %v1228_v43 = vld [vmem:[#allocation8 + $0x178] sm:$0xf0] }
  0x36   :  { %633 = vmatpush.bf16.msra.mxu0 %v1067_v0  ;;  %v1267_v38 = vor.u32 %v1454_v36, %v1266_v35  ;;  %v1423_v44 = vld [vmem:[#allocation8 + $0xd4] sm:$0xf]  ;;  %v1231_v45 = vor.u32 %v1443_v42, %v1228_v43  ;;  %v1148_v46 = vld [vmem:[#allocation8 + $0xd8] sm:$0xf0]  ;;  %v1258_v47 = vld [vmem:[#allocation8 + $0x1b0] sm:$0xf] }
  0x37   :  { %661 = vmatpush.bf16.msrb.mxu2 %v1195_v1  ;;  %v1452_v48 = vld [vmem:[#allocation8 + $0x1b4] sm:$0xf0]  ;;  %v1151_v49 = vor.u32 %v1423_v44, %v1148_v46  ;;  %v1409_v51 = vld [vmem:[#allocation8 + $0x64] sm:$0xf]  ;;  %v1092_v52 = vld [vmem:[#allocation8 + $0x68] sm:$0xf0] }
  0x38   :  { %v1259_v50 = vor.u32 %v1452_v48, %v1258_v47  ;;  %v1441_v53 = vld [vmem:[#allocation8 + $0x164] sm:$0xf]  ;;  %v1095_v54 = vor.u32 %v1409_v51, %v1092_v52  ;;  %v1220_v55 = vld [vmem:[#allocation8 + $0x168] sm:$0xf0]  ;;  %v1250_v60 = vld [vmem:[#allocation8 + $0x1a0] sm:$0xf] }
  0x39   :  { %648 = vmatpush.bf16.msrb.mxu1 %v1123_v6  ;;  %674 = vmatpush.bf16.msra.mxu3 %v1267_v38  ;;  %v1223_v56 = vor.u32 %v1441_v53, %v1220_v55  ;;  %v1421_v57 = vld [vmem:[#allocation8 + $0xc4] sm:$0xf]  ;;  %v1140_v58 = vld [vmem:[#allocation8 + $0xc8] sm:$0xf0]  ;;  %v1450_v61 = vld [vmem:[#allocation8 + $0x1a4] sm:$0xf0] }
  0x3a   :  { %634 = vmatpush.bf16.msra.mxu0 %v1059_v10  ;;  %v1143_v59 = vor.u32 %v1421_v57, %v1140_v58  ;;  %v1251_v62 = vor.u32 %v1450_v61, %v1250_v60  ;;  %v1407_v63 = vld [vmem:[#allocation8 + $0x54] sm:$0xf]  ;;  %v1084_v0 = vld [vmem:[#allocation8 + $0x58] sm:$0xf0]  ;;  %v1242_v8 = vld [vmem:[#allocation8 + $0x190] sm:$0xf] }
  0x3b   :  { %662 = vmatpush.bf16.msrb.mxu2 %v1187_v11  ;;  %v1439_v1 = vld [vmem:[#allocation8 + $0x154] sm:$0xf]  ;;  %v1087_v2 = vor.u32 %v1407_v63, %v1084_v0  ;;  %v1212_v3 = vld [vmem:[#allocation8 + $0x158] sm:$0xf0]  ;;  %v1448_v10 = vld [vmem:[#allocation8 + $0x194] sm:$0xf0] }
  0x3c   :  { %v1215_v4 = vor.u32 %v1439_v1, %v1212_v3  ;;  %v1419_v5 = vld [vmem:[#allocation8 + $0xb4] sm:$0xf]  ;;  %v1132_v6 = vld [vmem:[#allocation8 + $0xb8] sm:$0xf0]  ;;  %v1243_v11 = vor.u32 %v1448_v10, %v1242_v8  ;;  %v1076_v13 = vld [vmem:[#allocation8 + $0x48] sm:$0xf0] }
  0x3d   :  { %649 = vmatpush.bf16.msrb.mxu1 %v1115_v12  ;;  %675 = vmatpush.bf16.msra.mxu3 %v1259_v50  ;;  %v1135_v7 = vor.u32 %v1419_v5, %v1132_v6  ;;  %v1405_v12 = vld [vmem:[#allocation8 + $0x44] sm:$0xf]  ;;  %v1204_v16 = vld [vmem:[#allocation8 + $0x148] sm:$0xf0]  ;;  %v1234_v20 = vld [vmem:[#allocation8 + $0x180] sm:$0xf] }
  0x3e   :  { %635 = vmatpush.bf16.msra.mxu0 %v1051_v21  ;;  %v1437_v14 = vld [vmem:[#allocation8 + $0x144] sm:$0xf]  ;;  %v1124_v18 = vld [vmem:[#allocation8 + $0xa8] sm:$0xf0]  ;;  %v1446_v21 = vld [vmem:[#allocation8 + $0x184] sm:$0xf0] }
  0x3f   :  { %663 = vmatpush.bf16.msrb.mxu2 %v1179_v25  ;;  %v1207_v17 = vor.u32 %v1437_v14, %v1204_v16  ;;  %v1235_v22 = vor.u32 %v1446_v21, %v1234_v20  ;;  %v1403_v23 = vld [vmem:[#allocation8 + $0x34] sm:$0xf]  ;;  %v1068_v24 = vld [vmem:[#allocation8 + $0x38] sm:$0xf0]  ;;  %v1401_v35 = vld [vmem:[#allocation8 + $0x24] sm:$0xf] }
  0x40   :  { %v1435_v25 = vld [vmem:[#allocation8 + $0x134] sm:$0xf]  ;;  %v1071_v26 = vor.u32 %v1403_v23, %v1068_v24  ;;  %v1196_v27 = vld [vmem:[#allocation8 + $0x138] sm:$0xf0]  ;;  %v1060_v36 = vld [vmem:[#allocation8 + $0x28] sm:$0xf0] }
  0x41   :  { %650 = vmatpush.bf16.msrb.mxu1 %v1107_v15  ;;  %676 = vmatpush.bf16.msra.mxu3 %v1251_v62  ;;  %v1079_v15 = vor.u32 %v1405_v12, %v1076_v13  ;;  %v1459_v28 = vld [vmem:[#allocation8 + $0x1f4] sm:$0xf]  ;;  %v1199_v30 = vor.u32 %v1435_v25, %v1196_v27  ;;  %v1063_v38 = vor.u32 %v1401_v35, %v1060_v36  ;;  %v1188_v39 = vld [vmem:[#allocation8 + $0x128] sm:$0xf0]  ;;  %v1457_v40 = vld [vmem:[#allocation8 + $0x1e4] sm:$0xf] }
  0x42   :  { %636 = vmatpush.bf16.msra.mxu0 %v1043_v33  ;;  %v1415_v32 = vld [vmem:[#allocation8 + $0x94] sm:$0xf]  ;;  %v1116_v33 = vld [vmem:[#allocation8 + $0x98] sm:$0xf0]  ;;  %v1413_v44 = vld [vmem:[#allocation8 + $0x84] sm:$0xf] }
  0x43   :  { %664 = vmatpush.bf16.msrb.mxu2 %v1171_v37  ;;  %v1119_v34 = vor.u32 %v1415_v32, %v1116_v33  ;;  %v1433_v37 = vld [vmem:[#allocation8 + $0x124] sm:$0xf]  ;;  %v1399_v47 = vld [vmem:[#allocation8 + $0x14] sm:$0xf]  ;;  %v1052_v48 = vld [vmem:[#allocation8 + $0x18] sm:$0xf0] }
  0x44   :  { %v1191_v42 = vor.u32 %v1433_v37, %v1188_v39  ;;  %v1055_v50 = vor.u32 %v1399_v47, %v1052_v48  ;;  %v1180_v51 = vld [vmem:[#allocation8 + $0x118] sm:$0xf0]  ;;  %v1455_v52 = vld [vmem:[#allocation8 + $0x1d4] sm:$0xf]  ;;  %v1397_v57 = vld [vmem:[#allocation8 + $0x4] sm:$0xf] }
  0x45   :  { %699 = vmatpush.bf16.msra.mxu1 %v1167_v9  ;;  %v1417_v9 = vld [vmem:[#allocation8 + $0xa4] sm:$0xf]  ;;  %677 = vmatpush.bf16.msra.mxu3 %v1243_v11  ;;  %v1276_v53 = vld [vmem:[#allocation8 + $0x1d8] sm:$0xf0]  ;;  %v1044_v58 = vld [vmem:[#allocation8 + $0x8] sm:$0xf0] }
  0x46   :  { %685 = vmatpush.bf16.msrb.mxu0 %v1103_v41  ;;  %v1127_v19 = vor.u32 %v1417_v9, %v1124_v18  ;;  %v1284_v41 = vld [vmem:[#allocation8 + $0x1e8] sm:$0xf0]  ;;  %v1279_v55 = vor.u32 %v1455_v52, %v1276_v53  ;;  %v1047_v61 = vor.u32 %v1397_v57, %v1044_v58  ;;  %v1453_v63 = vld [vmem:[#allocation8 + $0x1c4] sm:$0xf]  ;;  %v1260_v5 = vld [vmem:[#allocation8 + $0x1b8] sm:$0xf0] }
  0x47   :  { %713 = vmatpush.bf16.msra.mxu2 %v1231_v45  ;;  %v1287_v43 = vor.u32 %v1457_v40, %v1284_v41  ;;  %v1108_v45 = vld [vmem:[#allocation8 + $0x88] sm:$0xf0]  ;;  %v1449_v10 = vld [vmem:[#allocation8 + $0x1a4] sm:$0xf]  ;;  %v1244_v9 = vld [vmem:[#allocation8 + $0x198] sm:$0xf0] }
  0x48   :  { %v1111_v46 = vor.u32 %v1413_v44, %v1108_v45  ;;  %v1172_v62 = vld [vmem:[#allocation8 + $0x108] sm:$0xf0]  ;;  %v1445_v24 = vld [vmem:[#allocation8 + $0x184] sm:$0xf]  ;;  %v1467_v47 = vld [vmem:[#allocation10 + $0x30] sm:$0xff]  ;;  %s1000_s26 = sshll.u32 %s1802_s9, 4  ;;  %s1001_s26 = int_to_ptr.hbm [resolvable:$true] %s1000_s26 }
  0x49   :  { %700 = vmatpush.bf16.msra.mxu1 %v1159_v29  ;;  %v1292_v29 = vld [vmem:[#allocation8 + $0x1f8] sm:$0xf0]  ;;  %678 = vmatpush.bf16.msra.mxu3 %v1235_v22  ;;  %v1268_v0 = vld [vmem:[#allocation8 + $0x1c8] sm:$0xf0]  ;;  %v1463_v52 = vld [vmem:[#allocation10 + $0x10] sm:$0xff] }
  0x4a   :  { %686 = vmatpush.bf16.msrb.mxu0 %v1095_v54  ;;  %v1295_v31 = vor.u32 %v1459_v28, %v1292_v29  ;;  %v1271_v3 = vor.u32 %v1453_v63, %v1268_v0  ;;  %v1252_v11 = vld [vmem:[#allocation8 + $0x1a8] sm:$0xf0]  ;;  %v1475_v53 = vld [vmem:[#allocation10 + $0x70] sm:$0xff]  ;;  %v1473_v57 = vld [vmem:[#allocation10 + $0x60] sm:$0xff] }
  0x4b   :  { %714 = vmatpush.bf16.msra.mxu2 %v1223_v56  ;;  %v1772_v56 = vld [vmem:[#allocation7] sm:$0xf]  ;;  %v1255_v14 = vor.u32 %v1449_v10, %v1252_v11  ;;  %v1236_v25 = vld [vmem:[#allocation8 + $0x188] sm:$0xf0]  ;;  %v303_v0 = vld [vmem:[%s1797_s4] sm:$0x3] }
  0x4c   :  { %v135_v1 = vperm.slane %v1772_v56, 1  ;;  %v136_v13 = vperm.slane %v1772_v56, 2  ;;  %v1239_v32 = vor.u32 %v1445_v24, %v1236_v25  ;;  %v137_v39 = vperm.slane %v1772_v56, 3  ;;  %v1466_v48 = vld [vmem:[#allocation10 + $0x28] sm:$0xff]  ;;  %v1472_v58 = vld [vmem:[#allocation10 + $0x58] sm:$0xff] }
  0x4d   :  { %701 = vmatpush.bf16.msra.mxu1 %v1151_v49  ;;  %727 = vmatpush.bf16.msrb.mxu3 %v1295_v31  ;;  %v1431_v49 = vld [vmem:[#allocation8 + $0x114] sm:$0xf]  ;;  %v1470_v63 = vld [vmem:[#allocation10 + $0x48] sm:$0xff] }
  0x4e   :  { %687 = vmatpush.bf16.msrb.mxu0 %v1087_v2  ;;  %v1183_v54 = vor.u32 %v1431_v49, %v1180_v51  ;;  %v1465_v49 = vld [vmem:[#allocation10 + $0x20] sm:$0xff]  ;;  %v1476_v51 = vld [vmem:[#allocation10 + $0x78] sm:$0xff] }
  0x4f   :  { %715 = vmatpush.bf16.msra.mxu2 %v1215_v4  ;;  %v1451_v4 = vld [vmem:[#allocation8 + $0x1b4] sm:$0xf] }
  0x50   :  { %v1263_v6 = vor.u32 %v1451_v4, %v1260_v5 }
  0x51   :  { %702 = vmatpush.bf16.msra.mxu1 %v1143_v59  ;;  %728 = vmatpush.bf16.msrb.mxu3 %v1287_v43  ;;  %v1429_v59 = vld [vmem:[#allocation8 + $0x104] sm:$0xf] }
  0x52   :  { %688 = vmatpush.bf16.msrb.mxu0 %v1079_v15  ;;  %v1175_v2 = vor.u32 %v1429_v59, %v1172_v62  ;;  %v134_v15 = vperm.slane %v1772_v56, 0  ;;  %v1461_v56 = vld [vmem:[#allocation10] sm:$0xff] }
  0x53   :  { %716 = vmatpush.bf16.msra.mxu2 %v1207_v17  ;;  %v1447_v17 = vld [vmem:[#allocation8 + $0x194] sm:$0xf] }
  0x54   :  { %v1247_v22 = vor.u32 %v1447_v17, %v1244_v9 }
  0x55   :  { %703 = vmatpush.bf16.msra.mxu1 %v1135_v7  ;;  %729 = vmatpush.bf16.msrb.mxu3 %v1279_v55  ;;  %v1474_v55 = vld [vmem:[#allocation10 + $0x68] sm:$0xff] }
  0x56   :  { %689 = vmatpush.bf16.msrb.mxu0 %v1071_v26 }
  0x57   :  { %717 = vmatpush.bf16.msra.mxu2 %v1199_v30 }
  0x59   :  { %704 = vmatpush.bf16.msra.mxu1 %v1127_v19  ;;  %730 = vmatpush.bf16.msrb.mxu3 %v1271_v3  ;;  %v1469_v3 = vld [vmem:[#allocation10 + $0x40] sm:$0xff] }
  0x5a   :  { %690 = vmatpush.bf16.msrb.mxu0 %v1063_v38 }
  0x5b   :  { %718 = vmatpush.bf16.msra.mxu2 %v1191_v42 }
  0x5d   :  { %705 = vmatpush.bf16.msra.mxu1 %v1119_v34  ;;  %731 = vmatpush.bf16.msrb.mxu3 %v1263_v6 }
  0x5e   :  { %691 = vmatpush.bf16.msrb.mxu0 %v1055_v50  ;;  %v1464_v50 = vld [vmem:[#allocation10 + $0x18] sm:$0xff] }
  0x5f   :  { %719 = vmatpush.bf16.msra.mxu2 %v1183_v54  ;;  %v1462_v54 = vld [vmem:[#allocation10 + $0x8] sm:$0xff] }
  0x61   :  { %706 = vmatpush.bf16.msra.mxu1 %v1111_v46  ;;  %732 = vmatpush.bf16.msrb.mxu3 %v1255_v14  ;;  %v1468_v46 = vld [vmem:[#allocation10 + $0x38] sm:$0xff] }
  0x62   :  { %692 = vmatpush.bf16.msrb.mxu0 %v1047_v61 }
  0x63   :  { %720 = vmatpush.bf16.msra.mxu2 %v1175_v2  ;;  %v305_v2 = vperm.slane %v303_v0, 0 }
  0x65   :  { %733 = vmatpush.bf16.msrb.mxu3 %v1247_v22 }
  0x69   :  { %734 = vmatpush.bf16.msrb.mxu3 %v1239_v32 }
  0xa1   :  { %v194_v60 = vpop.f32.mrf.mxu1 }
  0xa2   :  { %v195_v7 = vadd.f32 %v194_v60, %v135_v1  ;;  %v1471_v60 = vld [vmem:[#allocation10 + $0x50] sm:$0xff] }
  0xa4   :  { %v228_v18 = vmax.f32 %v195_v7, 0.0 }
  0xa6   :  { %v180_v8 = vpop.f32.mrf.mxu3 }
  0xa7   :  { %v181_v23 = vadd.f32 %v180_v8, %v134_v15 }
  0xa8   :  { %v208_v12 = vpop.f32.mrf.mxu2 }
  0xa9   :  { %v196_v16 = vpop.f32.mrf.mxu1  ;;  %v209_v20 = vadd.f32 %v208_v12, %v136_v13  ;;  %v227_v33 = vmax.f32 %v181_v23, 0.0 }
  0xaa   :  { %v197_v19 = vadd.f32 %v196_v16, %v135_v1 }
  0xab   :  { %v229_v30 = vmax.f32 %v209_v20, 0.0 }
  0xac   :  { %v232_v21 = vmax.f32 %v197_v19, 0.0  ;;  %v306_v19 = vperm.slane %v303_v0, 1 }
  0xae   :  { %v236_v26 = vpack.c.bf16 %v232_v21, %v228_v18  ;;  %v182_v27 = vpop.f32.mrf.mxu3 }
  0xaf   :  { %v183_v28 = vadd.f32 %v182_v27, %v134_v15 }
  0xb0   :  { %v210_v29 = vpop.f32.mrf.mxu2  ;;  %651 = vmatmul.bf16.vlgmr.msrb.gmra.mxu1 %v236_v26 }
  0xb1   :  { %v211_v31 = vadd.f32 %v210_v29, %v136_v13  ;;  %v231_v34 = vmax.f32 %v183_v28, 0.0  ;;  %893 = vmatpush.bf16.msrb.mxu1 %v1476_v51 }
  0xb3   :  { %v233_v35 = vmax.f32 %v211_v31, 0.0  ;;  %v235_v36 = vpack.c.bf16 %v231_v34, %v227_v33 }
  0xb5   :  { %v237_v37 = vpack.c.bf16 %v233_v35, %v229_v30  ;;  %637 = vmatmul.bf16.vlgmr.msra.gmra.mxu0 %v235_v36  ;;  %894 = vmatpush.bf16.msrb.mxu1 %v1475_v53 }
  0xb6   :  { %v222_v38 = vpop.f32.mrf.mxu3  ;;  %879 = vmatpush.bf16.msra.mxu0 %v1468_v46  ;;  %v1477_v46 = vld [vmem:[#allocation11] sm:$0xff] }
  0xb7   :  { %665 = vmatmul.bf16.vlgmr.msrb.gmra.mxu2 %v237_v37  ;;  %v223_v40 = vadd.f32 %v222_v38, %v137_v39 }
  0xb9   :  { %v230_v43 = vmax.f32 %v223_v40, 0.0  ;;  %895 = vmatpush.bf16.msrb.mxu1 %v1474_v55  ;;  %v1483_v40 = vld [vmem:[#allocation11 + $0x30] sm:$0xff] }
  0xba   :  { %880 = vmatpush.bf16.msra.mxu0 %v1467_v47 }
  0xbd   :  { %896 = vmatpush.bf16.msrb.mxu1 %v1473_v57 }
  0xbe   :  { %v224_v41 = vpop.f32.mrf.mxu3  ;;  %881 = vmatpush.bf16.msra.mxu0 %v1466_v48 }
  0xbf   :  { %v225_v42 = vadd.f32 %v224_v41, %v137_v39  ;;  %v1484_v39 = vld [vmem:[#allocation11 + $0x38] sm:$0xff]  ;;  %v1482_v41 = vld [vmem:[#allocation11 + $0x28] sm:$0xff] }
  0xc0   :  { %707 = vmatmul.bf16.vlgmr.msra.gmra.mxu1 %v236_v26  ;;  %978 = vmatpush.bf16.msrb.mxu2 %v1484_v39 }
  0xc1   :  { %v234_v44 = vmax.f32 %v225_v42, 0.0  ;;  %897 = vmatpush.bf16.msrb.mxu1 %v1472_v58  ;;  %v1481_v42 = vld [vmem:[#allocation11 + $0x20] sm:$0xff] }
  0xc2   :  { %882 = vmatpush.bf16.msra.mxu0 %v1465_v49  ;;  %v1498_v49 = vld [vmem:[%s1799_s6] ss:$0 sm:$0xff] }
  0xc3   :  { %v238_v45 = vpack.c.bf16 %v234_v44, %v230_v43  ;;  %v1480_v43 = vld [vmem:[#allocation11 + $0x18] sm:$0xff]  ;;  %v1479_v44 = vld [vmem:[#allocation11 + $0x10] sm:$0xff] }
  0xc4   :  { %979 = vmatpush.bf16.msrb.mxu2 %v1483_v40 }
  0xc5   :  { %679 = vmatmul.bf16.vlgmr.msra.gmra.mxu3 %v238_v45  ;;  %693 = vmatmul.bf16.vlgmr.msrb.gmra.mxu0 %v235_v36 }
  0xc6   :  { %883 = vmatpush.bf16.msra.mxu0 %v1464_v50  ;;  %898 = vmatpush.bf16.msrb.mxu1 %v1471_v60 }
  0xc7   :  { %721 = vmatmul.bf16.vlgmr.msra.gmra.mxu2 %v237_v37 }
  0xc8   :  { %980 = vmatpush.bf16.msrb.mxu2 %v1482_v41 }
  0xca   :  { %884 = vmatpush.bf16.msra.mxu0 %v1463_v52  ;;  %899 = vmatpush.bf16.msrb.mxu1 %v1470_v63 }
  0xcc   :  { %981 = vmatpush.bf16.msrb.mxu2 %v1481_v42 }
  0xce   :  { %885 = vmatpush.bf16.msra.mxu0 %v1462_v54  ;;  %900 = vmatpush.bf16.msrb.mxu1 %v1469_v3 }
  0xd0   :  { %982 = vmatpush.bf16.msrb.mxu2 %v1480_v43 }
  0xd2   :  { %886 = vmatpush.bf16.msra.mxu0 %v1461_v56 }
  0xd4   :  { %983 = vmatpush.bf16.msrb.mxu2 %v1479_v44 }
  0xd5   :  { %735 = vmatmul.bf16.vlgmr.msrb.gmra.mxu3 %v238_v45  ;;  %v1478_v45 = vld [vmem:[#allocation11 + $0x8] sm:$0xff] }
  0xd8   :  { %984 = vmatpush.bf16.msrb.mxu2 %v1478_v45 }
  0xdc   :  { %985 = vmatpush.bf16.msrb.mxu2 %v1477_v46 }
 0x12d   :  { %v652_v61 = vpop.f32.mrf.mxu1 }
 0x132   :  { %v638_v59 = vpop.f32.mrf.mxu0 }
 0x133   :  { %v639_v4 = vadd.f32 %v638_v59, %v305_v2  ;;  %v1499_v59 = vld [vmem:[%s1801_s8] ss:$0 sm:$0xff] }
 0x135   :  { %v654_v5 = vpop.f32.mrf.mxu1  ;;  %v653_v10 = vadd.f32 %v652_v61, %v639_v4 }
 0x13a   :  { %v666_v62 = vpop.f32.mrf.mxu2  ;;  %v640_v1 = vpop.f32.mrf.mxu0 }
 0x13b   :  { %v641_v8 = vadd.f32 %v640_v1, %v305_v2  ;;  %v667_v12 = vadd.f32 %v666_v62, %v653_v10 }
 0x13d   :  { %v655_v13 = vadd.f32 %v654_v5, %v641_v8  ;;  %v708_v9 = vpop.f32.mrf.mxu1 }
 0x142   :  { %v668_v6 = vpop.f32.mrf.mxu2  ;;  %v694_v11 = vpop.f32.mrf.mxu0 }
 0x143   :  { %v669_v14 = vadd.f32 %v668_v6, %v655_v13  ;;  %v695_v24 = vadd.f32 %v694_v11, %v306_v19 }
 0x145   :  { %v709_v27 = vadd.f32 %v708_v9, %v695_v24  ;;  %v710_v28 = vpop.f32.mrf.mxu1 }
 0x148   :  { %v680_v7 = vpop.f32.mrf.mxu3 }
 0x149   :  { %v681_v15 = vadd.f32 %v680_v7, %v667_v12 }
 0x14a   :  { %v722_v18 = vpop.f32.mrf.mxu2  ;;  %v696_v23 = vpop.f32.mrf.mxu0 }
 0x14b   :  { %v741_v20 = vmax.f32 %v681_v15, 0.0  ;;  %v697_v26 = vadd.f32 %v696_v23, %v306_v19  ;;  %v723_v30 = vadd.f32 %v722_v18, %v709_v27 }
 0x14d   :  { %v711_v31 = vadd.f32 %v710_v28, %v697_v26 }
 0x150   :  { %v682_v16 = vpop.f32.mrf.mxu3 }
 0x151   :  { %v683_v17 = vadd.f32 %v682_v16, %v669_v14 }
 0x152   :  { %v724_v29 = vpop.f32.mrf.mxu2 }
 0x153   :  { %v743_v21 = vmax.f32 %v683_v17, 0.0  ;;  %v725_v32 = vadd.f32 %v724_v29, %v711_v31 }
 0x155   :  { %v745_v22 = vpack.c.bf16 %v743_v21, %v741_v20 }
 0x157   :  { %887 = vmatmul.bf16.vlgmr.msra.gmra.mxu0 %v745_v22 }
 0x158   :  { %v736_v25 = vpop.f32.mrf.mxu3 }
 0x159   :  { %v737_v33 = vadd.f32 %v736_v25, %v723_v30 }
 0x15b   :  { %v742_v36 = vmax.f32 %v737_v33, 0.0 }
 0x160   :  { %v738_v34 = vpop.f32.mrf.mxu3 }
 0x161   :  { %v739_v35 = vadd.f32 %v738_v34, %v725_v32 }
 0x163   :  { %v744_v37 = vmax.f32 %v739_v35, 0.0 }
 0x165   :  { %v746_v38 = vpack.c.bf16 %v744_v37, %v742_v36 }
 0x167   :  { %901 = vmatmul.bf16.vlgmr.msrb.gmra.mxu1 %v746_v38 }
 0x1d4   :  { %v888_v47 = vpop.f32.mrf.mxu0 }
 0x1d5   :  { %v889_v51 = vadd.f32 %v1498_v49, %v888_v47 }
 0x1dc   :  { %v890_v50 = vpop.f32.mrf.mxu0 }
 0x1dd   :  { %v891_v52 = vadd.f32 %v1498_v49, %v890_v50 }
 0x1e4   :  { %v902_v48 = vpop.f32.mrf.mxu1 }
 0x1e5   :  { %v903_v53 = vadd.f32 %v902_v48, %v889_v51 }
 0x1e7   :  { %v907_v56 = vmax.f32 %v903_v53, 0.0 }
 0x1ec   :  { %v904_v54 = vpop.f32.mrf.mxu1 }
 0x1ed   :  { %v905_v55 = vadd.f32 %v904_v54, %v891_v52 }
 0x1ef   :  { %v908_v57 = vmax.f32 %v905_v55, 0.0 }
 0x1f1   :  { %v909_v58 = vpack.c.bf16 %v908_v57, %v907_v56 }
 0x1f3   :  { %986 = vmatmul.bf16.vlgmr.msrb.gmra.mxu2 %v909_v58 }
 0x276   :  { %v987_v60 = vpop.f32.mrf.mxu2 }
 0x277   :  { %v988_v61 = vadd.f32 %v1499_v59, %v987_v60 }
 0x279   :  { %992 = vst [vmem:[#allocation13] sm:$0xff] %v988_v61 }
 0x27e   :  { %v989_v62 = vpop.f32.mrf.mxu2 }
 0x27f   :  { %v990_v63 = vadd.f32 %v1499_v59, %v989_v62 }
 0x281   :  { %993 = vst [vmem:[#allocation13 + $0x8] sm:$0xff] %v990_v63 }
 0x282   :  { %1006 = dma.vmem_to_hbm [thread:$0]  %s999_s25, 256, %s1001_s26, [#allocation4], %s1682_s21, %s1682_s21, %s1683_s22  }
 0x283   :  { %1676 = dma.done.wait [#allocation4], 256  }
 0x284   :  { %1677 = vsyncadd [#allocation4], 4294967040 }
 0x285   :  { %1011 = vsyncpa [#allocation3], 1 }
 0x286   :  { %1012 = vsyncpa [#allocation6], 1 }
 0x287   :  { %1013 = vsyncpa [#allocation9], 1 }
 0x288   :  { %1014 = vsyncpa [#allocation12], 1 }
 0x289   :  { %1015 = vsyncpa [#allocation4], 1 }

</bundles_post_ra>
